<compile_context>
chip_gen: v5e
topology: v5e:2x2
jax: 0.10.0
libtpu: 0.0.40
codegen_flags: <defaults>
</compile_context>

<pallas_src>
import functools
import math

import jax
import jax.numpy as jnp
from jax.experimental import pallas as pl
from jax.experimental.pallas import tpu as pltpu


def head_kernel(box_ref, vw_ref, vb_ref, uw_ref, ub_ref,
                bns_ref, bnb_ref, fcw_ref, fcb_ref, out_ref,
                *, neighbor_num, inv_spatial):
    """One grid step == one batch element."""
    wdt = vw_ref.dtype  # matmul-operand dtype (f32 default; bf16 on v6e/v7x prod)

    # f_v = box_features.mean(dim=-2): cheap sublane reduction, keeps MXU free.
    box = box_ref[0]                                         # (N, S, C) f32
    f_v = jnp.sum(box, axis=1) * inv_spatial                 # (N, C)   f32

    # ---------------- GNN_Node (metric='dots'), per batch ----------------
    # si[i, j] = <f_v_i, f_v_j>; kept in f32 so top-k / tie behavior matches torch.
    si = jax.lax.dot_general(f_v, f_v, (((1,), (1,)), ((), ())),
                             preferred_element_type=jnp.float32)      # (N, N)

    # torch: threshold = kth-largest per row; adj = (si >= threshold).
    # Equivalent (incl. ties): adj[i,j] = 1 iff #{j' : si[i,j'] > si[i,j]} < k.
    gt = (si[:, None, :] > si[:, :, None]).astype(jnp.float32)        # (N, N, N)
    counts = jnp.sum(gt, axis=-1)                                     # (N, N)
    adj = (counts < neighbor_num).astype(jnp.float32)                 # (N, N)

    # normalize_digraph: D^{-1/2} adj D^{-1/2} (row-sum degrees), folded into
    # two row scalings -- no A materialization, no transpose.
    deg = jnp.sum(adj, axis=-1, keepdims=True)                        # (N, 1), >= k
    dinv = jax.lax.rsqrt(deg)

    # V / U projections (PyTorch Linear: y = x W^T + b; W^T pre-done on host).
    fvw = f_v.astype(wdt)
    Vx = jnp.dot(fvw, vw_ref[...], preferred_element_type=jnp.float32) + vb_ref[...]
    Ux = jnp.dot(fvw, uw_ref[...], preferred_element_type=jnp.float32) + ub_ref[...]

    # aggregate = (D^{-1/2} adj D^{-1/2}) @ V(x)
    agg = dinv * jnp.dot(adj.astype(wdt), (dinv * Vx).astype(wdt),
                         preferred_element_type=jnp.float32)

    # bnv(aggregate + U(x)): BatchNorm1d(num_node), eval mode -- running stats
    # and affine folded into per-node scale/shift.
    # TODO(synk): training-mode (batch-statistics) BatchNorm is not reproduced.
    y = (agg + Ux) * bns_ref[...] + bnb_ref[...]

    # x = relu(f_v + bnv(...))
    g = jnp.maximum(f_v + y, 0.0)

    # cl = fc(x): lane-dense padded output (wrapper slices the valid columns).
    out_ref[0] = (jnp.dot(g.astype(wdt), fcw_ref[...],
                          preferred_element_type=jnp.float32) + fcb_ref[...])


@functools.partial(jax.jit,
                   static_argnames=("num_node", "neighbor_num", "matmul_dtype"))
def head_forward(global_features, box_features, params, *,
                 num_node, neighbor_num, matmul_dtype=jnp.float32):
    # torch Head only uses global_features for batch_size.
    b = global_features.shape[0]
    n = num_node
    m, S, C = box_features.shape                       # (B*N, S, C)
    assert m == b * n
    num_classes = params["fc_w"].shape[0]

    # ---- trace-time preprocessing (tiny, outside the kernel) ----
    box = box_features.reshape(b, n, S, C).astype(jnp.float32)   # torch .reshape

    wdt = matmul_dtype
    v_w = params["V_w"].T.astype(wdt)                  # (C, C)
    u_w = params["U_w"].T.astype(wdt)                  # (C, C)
    v_b = params["V_b"].reshape(1, C).astype(jnp.float32)
    u_b = params["U_b"].reshape(1, C).astype(jnp.float32)

    # Fold BatchNorm1d(num_node) running stats + affine into per-node scale/shift.
    bn_scale = params["bn_weight"] / jnp.sqrt(params["bn_running_var"] + 1e-5)
    bn_shift = params["bn_bias"] - params["bn_running_mean"] * bn_scale
    bn_scale = bn_scale.reshape(n, 1).astype(jnp.float32)
    bn_shift = bn_shift.reshape(n, 1).astype(jnp.float32)

    # Pre-transpose fc and zero-pad to a lane-dense multiple of 128 columns.
    out_pad = max(128, ((num_classes + 127) // 128) * 128)
    fc_w = jnp.zeros((C, out_pad), wdt).at[:, :num_classes].set(
        params["fc_w"].T.astype(wdt))
    fc_b = jnp.zeros((1, out_pad), jnp.float32).at[:, :num_classes].set(
        params["fc_b"][None, :])

    # VMEM budget: double-buffered per-step I/O + resident weights + temporaries.
    wsz = jnp.dtype(wdt).itemsize
    io_bytes = 2 * (n * S * C * 4 + n * out_pad * 4)
    weight_bytes = (2 * C * C + C * out_pad) * wsz + (2 * C + out_pad + 2 * n) * 4
    temp_bytes = (n * n * n + 4 * n * n + 8 * n * C) * 4
    vmem_limit = int(min(64 * 2**20,
                         max(16 * 2**20, 4 * (io_bytes + weight_bytes + temp_bytes))))

    kernel = functools.partial(head_kernel,
                               neighbor_num=neighbor_num,
                               inv_spatial=1.0 / S)

    out = pl.pallas_call(
        kernel,
        out_shape=jax.ShapeDtypeStruct((b, n, out_pad), jnp.float32),
        grid=(b,),                                    # one step per batch element
        in_specs=[
            pl.BlockSpec((1, n, S, C), lambda i: (i, 0, 0, 0)),   # box features
            pl.BlockSpec((C, C), lambda i: (0, 0)),               # V^T (resident)
            pl.BlockSpec((1, C), lambda i: (0, 0)),               # V bias
            pl.BlockSpec((C, C), lambda i: (0, 0)),               # U^T (resident)
            pl.BlockSpec((1, C), lambda i: (0, 0)),               # U bias
            pl.BlockSpec((n, 1), lambda i: (0, 0)),               # bn scale per node
            pl.BlockSpec((n, 1), lambda i: (0, 0)),               # bn shift per node
            pl.BlockSpec((C, out_pad), lambda i: (0, 0)),         # fc^T, zero-padded
            pl.BlockSpec((1, out_pad), lambda i: (0, 0)),         # fc bias, padded
        ],
        out_specs=pl.BlockSpec((1, n, out_pad), lambda i: (i, 0, 0)),
        compiler_params=pltpu.CompilerParams(
            dimension_semantics=("parallel",),        # megacore sharding on v7x
            vmem_limit_bytes=vmem_limit),
    )(box, v_w, v_b, u_w, u_b, bn_scale, bn_shift, fc_w, fc_b)

    # torch: cl = fc(f_v.view(-1, C)) -> (B*N, num_classes)
    return out.reshape(b * n, out_pad)[:, :num_classes]


if __name__ == "__main__":
    key = jax.random.PRNGKey(0)
    b, n, S, C = 2, 8, 6, 32          # batch, num_node, spatial, in_channels
    num_classes, neighbor_num = 4, 3

    keys = jax.random.split(key, 6)
    global_features = jax.random.normal(keys[0], (b, C), jnp.float32)
    box_features = jax.random.normal(keys[1], (b * n, S, C), jnp.float32)

    std = math.sqrt(2.0 / C)          # matches U/V weight init in GNN_Node
    params = dict(
        U_w=std * jax.random.normal(keys[2], (C, C), jnp.float32),
        U_b=jnp.zeros((C,), jnp.float32),
        V_w=std * jax.random.normal(keys[3], (C, C), jnp.float32),
        V_b=jnp.zeros((C,), jnp.float32),
        bn_weight=jnp.ones((n,), jnp.float32),      # bnv.weight.fill_(1)
        bn_bias=jnp.zeros((n,), jnp.float32),       # bnv.bias.zero_()
        bn_running_mean=jnp.zeros((n,), jnp.float32),
        bn_running_var=jnp.ones((n,), jnp.float32),
        fc_w=0.1 * jax.random.normal(keys[4], (num_classes, C), jnp.float32),
        fc_b=jnp.zeros((num_classes,), jnp.float32),
    )

    cl = head_forward(global_features, box_features, params,
                      num_node=n, neighbor_num=neighbor_num)
    jax.block_until_ready(cl)
    assert cl.shape == (b * n, num_classes)
    print("KERNEL_OK")
</pallas_src>

<mosaic_0001>
module attributes {stable_mosaic.version = 11 : i64} {
  func.func @head_kernel(%arg0: i32, %arg1: memref<1x8x6x32xf32, #tpu.memory_space<vmem>>, %arg2: memref<32x32xf32, #tpu.memory_space<vmem>>, %arg3: memref<1x32xf32, #tpu.memory_space<vmem>>, %arg4: memref<32x32xf32, #tpu.memory_space<vmem>>, %arg5: memref<1x32xf32, #tpu.memory_space<vmem>>, %arg6: memref<8x1xf32, #tpu.memory_space<vmem>>, %arg7: memref<8x1xf32, #tpu.memory_space<vmem>>, %arg8: memref<32x128xf32, #tpu.memory_space<vmem>>, %arg9: memref<1x128xf32, #tpu.memory_space<vmem>>, %arg10: memref<1x8x128xf32, #tpu.memory_space<vmem>>) attributes {dimension_semantics = [#tpu.dimension_semantics<parallel>], iteration_bounds = array<i64: 2>, scalar_prefetch = 0 : i64, scratch_operands = 0 : i64, tpu.core_type = #tpu.core_type<tc>, window_params = [{transform_indices = @transform_0, window_bounds = array<i64: 1, 8, 6, 32>}, {pipeline_mode = #tpu.pipeline_mode<synchronous>, transform_indices = @transform_1, window_bounds = array<i64: 32, 32>}, {pipeline_mode = #tpu.pipeline_mode<synchronous>, transform_indices = @transform_2, window_bounds = array<i64: 1, 32>}, {pipeline_mode = #tpu.pipeline_mode<synchronous>, transform_indices = @transform_3, window_bounds = array<i64: 32, 32>}, {pipeline_mode = #tpu.pipeline_mode<synchronous>, transform_indices = @transform_4, window_bounds = array<i64: 1, 32>}, {pipeline_mode = #tpu.pipeline_mode<synchronous>, transform_indices = @transform_5, window_bounds = array<i64: 8, 1>}, {pipeline_mode = #tpu.pipeline_mode<synchronous>, transform_indices = @transform_6, window_bounds = array<i64: 8, 1>}, {pipeline_mode = #tpu.pipeline_mode<synchronous>, transform_indices = @transform_7, window_bounds = array<i64: 32, 128>}, {pipeline_mode = #tpu.pipeline_mode<synchronous>, transform_indices = @transform_8, window_bounds = array<i64: 1, 128>}, {transform_indices = @transform_9, window_bounds = array<i64: 1, 8, 128>}]} {
    %c0 = arith.constant 0 : index
    %c0_0 = arith.constant 0 : index
    %c0_1 = arith.constant 0 : index
    %c0_2 = arith.constant 0 : index
    %0 = vector.load %arg1[%c0, %c0_0, %c0_1, %c0_2] : memref<1x8x6x32xf32, #tpu.memory_space<vmem>>, vector<1x8x6x32xf32>
    %1 = vector.shape_cast %0 : vector<1x8x6x32xf32> to vector<8x6x32xf32>
    %cst = arith.constant dense<0.000000e+00> : vector<8x32xf32>
    %2 = vector.multi_reduction <add>, %1, %cst [1] : vector<8x6x32xf32> to vector<8x32xf32>
    %cst_3 = arith.constant 0.166666672 : f32
    %3 = vector.broadcast %cst_3 : f32 to vector<8x32xf32>
    %4 = arith.mulf %2, %3 : vector<8x32xf32>
    %cst_4 = arith.constant dense<0.000000e+00> : vector<8x8xf32>
    %5 = tpu.matmul %4, %4, %cst_4 {dimension_numbers = #tpu.dot_dimension_numbers<[1], [1], [0], [0], [0, 0, 1, 0], [], []>} : vector<8x32xf32>, vector<8x32xf32>, vector<8x8xf32> -> vector<8x8xf32>
    %6 = vector.shape_cast %5 : vector<8x8xf32> to vector<8x1x8xf32>
    %7 = vector.shape_cast %5 : vector<8x8xf32> to vector<8x8x1xf32>
    %8 = vector.broadcast %6 : vector<8x1x8xf32> to vector<8x8x8xf32>
    %9 = vector.broadcast %7 : vector<8x8x1xf32> to vector<8x8x8xf32>
    %10 = arith.cmpf ogt, %8, %9 : vector<8x8x8xf32>
    %11 = arith.extui %10 : vector<8x8x8xi1> to vector<8x8x8xi32>
    %12 = arith.sitofp %11 : vector<8x8x8xi32> to vector<8x8x8xf32>
    %cst_5 = arith.constant dense<0.000000e+00> : vector<8x8xf32>
    %13 = vector.multi_reduction <add>, %12, %cst_5 [2] : vector<8x8x8xf32> to vector<8x8xf32>
    %cst_6 = arith.constant 3.000000e+00 : f32
    %14 = vector.broadcast %cst_6 : f32 to vector<8x8xf32>
    %15 = arith.cmpf olt, %13, %14 : vector<8x8xf32>
    %16 = arith.extui %15 : vector<8x8xi1> to vector<8x8xi32>
    %17 = arith.sitofp %16 : vector<8x8xi32> to vector<8x8xf32>
    %cst_7 = arith.constant dense<0.000000e+00> : vector<8xf32>
    %18 = vector.multi_reduction <add>, %17, %cst_7 [1] : vector<8x8xf32> to vector<8xf32>
    %19 = vector.shape_cast %18 : vector<8xf32> to vector<8x1xf32>
    %20 = math.rsqrt %19 : vector<8x1xf32>
    %c0_8 = arith.constant 0 : index
    %c0_9 = arith.constant 0 : index
    %21 = vector.load %arg2[%c0_8, %c0_9] : memref<32x32xf32, #tpu.memory_space<vmem>>, vector<32x32xf32>
    %cst_10 = arith.constant dense<0.000000e+00> : vector<8x32xf32>
    %22 = tpu.matmul %4, %21, %cst_10 {dimension_numbers = #tpu.dot_dimension_numbers<[1], [0], [0], [1], [0, 0, 1, 1], [], []>} : vector<8x32xf32>, vector<32x32xf32>, vector<8x32xf32> -> vector<8x32xf32>
    %c0_11 = arith.constant 0 : index
    %c0_12 = arith.constant 0 : index
    %23 = vector.load %arg3[%c0_11, %c0_12] : memref<1x32xf32, #tpu.memory_space<vmem>>, vector<1x32xf32>
    %24 = vector.broadcast %23 : vector<1x32xf32> to vector<8x32xf32>
    %25 = arith.addf %22, %24 : vector<8x32xf32>
    %c0_13 = arith.constant 0 : index
    %c0_14 = arith.constant 0 : index
    %26 = vector.load %arg4[%c0_13, %c0_14] : memref<32x32xf32, #tpu.memory_space<vmem>>, vector<32x32xf32>
    %cst_15 = arith.constant dense<0.000000e+00> : vector<8x32xf32>
    %27 = tpu.matmul %4, %26, %cst_15 {dimension_numbers = #tpu.dot_dimension_numbers<[1], [0], [0], [1], [0, 0, 1, 1], [], []>} : vector<8x32xf32>, vector<32x32xf32>, vector<8x32xf32> -> vector<8x32xf32>
    %c0_16 = arith.constant 0 : index
    %c0_17 = arith.constant 0 : index
    %28 = vector.load %arg5[%c0_16, %c0_17] : memref<1x32xf32, #tpu.memory_space<vmem>>, vector<1x32xf32>
    %29 = vector.broadcast %28 : vector<1x32xf32> to vector<8x32xf32>
    %30 = arith.addf %27, %29 : vector<8x32xf32>
    %31 = vector.broadcast %20 : vector<8x1xf32> to vector<8x32xf32>
    %32 = arith.mulf %31, %25 : vector<8x32xf32>
    %cst_18 = arith.constant dense<0.000000e+00> : vector<8x32xf32>
    %33 = tpu.matmul %17, %32, %cst_18 {dimension_numbers = #tpu.dot_dimension_numbers<[1], [0], [0], [1], [0, 0, 1, 1], [], []>} : vector<8x8xf32>, vector<8x32xf32>, vector<8x32xf32> -> vector<8x32xf32>
    %34 = vector.broadcast %20 : vector<8x1xf32> to vector<8x32xf32>
    %35 = arith.mulf %34, %33 : vector<8x32xf32>
    %36 = arith.addf %35, %30 : vector<8x32xf32>
    %c0_19 = arith.constant 0 : index
    %c0_20 = arith.constant 0 : index
    %37 = vector.load %arg6[%c0_19, %c0_20] : memref<8x1xf32, #tpu.memory_space<vmem>>, vector<8x1xf32>
    %38 = vector.broadcast %37 : vector<8x1xf32> to vector<8x32xf32>
    %39 = arith.mulf %36, %38 : vector<8x32xf32>
    %c0_21 = arith.constant 0 : index
    %c0_22 = arith.constant 0 : index
    %40 = vector.load %arg7[%c0_21, %c0_22] : memref<8x1xf32, #tpu.memory_space<vmem>>, vector<8x1xf32>
    %41 = vector.broadcast %40 : vector<8x1xf32> to vector<8x32xf32>
    %42 = arith.addf %39, %41 : vector<8x32xf32>
    %43 = arith.addf %4, %42 : vector<8x32xf32>
    %cst_23 = arith.constant 0.000000e+00 : f32
    %44 = vector.broadcast %cst_23 : f32 to vector<8x32xf32>
    %45 = arith.maximumf %43, %44 : vector<8x32xf32>
    %c0_24 = arith.constant 0 : index
    %c0_25 = arith.constant 0 : index
    %46 = vector.load %arg8[%c0_24, %c0_25] : memref<32x128xf32, #tpu.memory_space<vmem>>, vector<32x128xf32>
    %cst_26 = arith.constant dense<0.000000e+00> : vector<8x128xf32>
    %47 = tpu.matmul %45, %46, %cst_26 {dimension_numbers = #tpu.dot_dimension_numbers<[1], [0], [0], [1], [0, 0, 1, 1], [], []>} : vector<8x32xf32>, vector<32x128xf32>, vector<8x128xf32> -> vector<8x128xf32>
    %c0_27 = arith.constant 0 : index
    %c0_28 = arith.constant 0 : index
    %48 = vector.load %arg9[%c0_27, %c0_28] : memref<1x128xf32, #tpu.memory_space<vmem>>, vector<1x128xf32>
    %49 = vector.broadcast %48 : vector<1x128xf32> to vector<8x128xf32>
    %50 = arith.addf %47, %49 : vector<8x128xf32>
    %c0_29 = arith.constant 0 : index
    %c0_30 = arith.constant 0 : index
    %c0_31 = arith.constant 0 : index
    %51 = vector.load %arg10[%c0_29, %c0_30, %c0_31] : memref<1x8x128xf32, #tpu.memory_space<vmem>>, vector<1x8x128xf32>
    %52 = vector.shape_cast %51 : vector<1x8x128xf32> to vector<8x128xf32>
    %53 = vector.shape_cast %50 : vector<8x128xf32> to vector<1x8x128xf32>
    tpu.vector_store %arg10[%c0_29, %c0_30, %c0_31], %53 {strides = array<i32>} : memref<1x8x128xf32, #tpu.memory_space<vmem>>, vector<1x8x128xf32>,
    return
  }
  func.func @transform_0(%arg0: i32) -> (i32, i32, i32, i32) {
    %c0_i32 = arith.constant 0 : i32
    %c0_i32_0 = arith.constant 0 : i32
    %c0_i32_1 = arith.constant 0 : i32
    %c0_i32_2 = arith.constant 0 : i32
    return %arg0, %c0_i32, %c0_i32_0, %c0_i32_1 : i32, i32, i32, i32
  }
  func.func @transform_1(%arg0: i32) -> (i32, i32) {
    %c0_i32 = arith.constant 0 : i32
    %c0_i32_0 = arith.constant 0 : i32
    %c0_i32_1 = arith.constant 0 : i32
    return %c0_i32, %c0_i32_0 : i32, i32
  }
  func.func @transform_2(%arg0: i32) -> (i32, i32) {
    %c0_i32 = arith.constant 0 : i32
    %c0_i32_0 = arith.constant 0 : i32
    %c0_i32_1 = arith.constant 0 : i32
    return %c0_i32, %c0_i32_0 : i32, i32
  }
  func.func @transform_3(%arg0: i32) -> (i32, i32) {
    %c0_i32 = arith.constant 0 : i32
    %c0_i32_0 = arith.constant 0 : i32
    %c0_i32_1 = arith.constant 0 : i32
    return %c0_i32, %c0_i32_0 : i32, i32
  }
  func.func @transform_4(%arg0: i32) -> (i32, i32) {
    %c0_i32 = arith.constant 0 : i32
    %c0_i32_0 = arith.constant 0 : i32
    %c0_i32_1 = arith.constant 0 : i32
    return %c0_i32, %c0_i32_0 : i32, i32
  }
  func.func @transform_5(%arg0: i32) -> (i32, i32) {
    %c0_i32 = arith.constant 0 : i32
    %c0_i32_0 = arith.constant 0 : i32
    %c0_i32_1 = arith.constant 0 : i32
    return %c0_i32, %c0_i32_0 : i32, i32
  }
  func.func @transform_6(%arg0: i32) -> (i32, i32) {
    %c0_i32 = arith.constant 0 : i32
    %c0_i32_0 = arith.constant 0 : i32
    %c0_i32_1 = arith.constant 0 : i32
    return %c0_i32, %c0_i32_0 : i32, i32
  }
  func.func @transform_7(%arg0: i32) -> (i32, i32) {
    %c0_i32 = arith.constant 0 : i32
    %c0_i32_0 = arith.constant 0 : i32
    %c0_i32_1 = arith.constant 0 : i32
    return %c0_i32, %c0_i32_0 : i32, i32
  }
  func.func @transform_8(%arg0: i32) -> (i32, i32) {
    %c0_i32 = arith.constant 0 : i32
    %c0_i32_0 = arith.constant 0 : i32
    %c0_i32_1 = arith.constant 0 : i32
    return %c0_i32, %c0_i32_0 : i32, i32
  }
  func.func @transform_9(%arg0: i32) -> (i32, i32, i32) {
    %c0_i32 = arith.constant 0 : i32
    %c0_i32_0 = arith.constant 0 : i32
    %c0_i32_1 = arith.constant 0 : i32
    return %arg0, %c0_i32, %c0_i32_0 : i32, i32, i32
  }
}

</mosaic_0001>

<bundles_post_ra>
// kernel: head_forward.1
= control target key start
LH: loop header
LB: loop body
LE: loop exit
PB: predicated region body
PF: predicated region fallthrough
CT: control target
= control target key end

     0   :  { %s988_s30 = smov 0   ;;  %s1160_s0 = inlined_call_operand.vmem [shape: f32[2,8,6,32], index: 0, kind: input, shape index: {}]   ;;  %s1161_s1 = inlined_call_operand.vmem [shape: f32[32,32], index: 1, kind: input, shape index: {}]   ;;  %s1162_s2 = inlined_call_operand.vmem [shape: f32[1,32], index: 2, kind: input, shape index: {}]   ;;  %s1163_s3 = inlined_call_operand.vmem [shape: f32[32,32], index: 3, kind: input, shape index: {}]   ;;  %s1164_s4 = inlined_call_operand.vmem [shape: f32[1,32], index: 4, kind: input, shape index: {}]   ;;  %s1165_s5 = inlined_call_operand.vmem [shape: f32[8,1], index: 5, kind: input, shape index: {}]   ;;  %s1166_s6 = inlined_call_operand.vmem [shape: f32[8,1], index: 6, kind: input, shape index: {}]   ;;  %s1167_s7 = inlined_call_operand.vmem [shape: f32[32,128], index: 7, kind: input, shape index: {}]   ;;  %s1168_s8 = inlined_call_operand.vmem [shape: f32[1,128], index: 8, kind: input, shape index: {}]   ;;  %s1169_s9 = inlined_call_operand.vmem [shape: f32[2,8,128], index: 9, kind: output, shape index: {}]  }
   0x1 LB: > { %s874_s10 = sadd.s32 4294967295, %s934_s30   ;;  %p878_p0 = scmp.ge.s32.totalorder %s934_s30, 1  ;;  %s934_s30 = sphi %s988_s30, %s19_s30  }
   0x2   : > { %p287_p1 = scmp.lt.s32.totalorder %s934_s30, 3 }
   0x4   : > { %p288_p2 = pnand %p878_p0, %p287_p1 }
   0x5   : > { %p322_p3 = scmp.lt.s32.totalorder (!%p288_p2), %s874_s10, 1 }
   0x6   : > { %291 = sbr.rel (%p288_p2) target bundleno = 861 (0x35d), region = 56 }
   0xb   : > { %s1171_s10 = smov (!%p322_p3, %s874_s10), 1  ;;  %v458_v0 = vlaneseq  ;;  %vm339_vm0 = vcmask 259072   ;;  %vm412_vm1 = vcmask 1041409   ;;  %vm414_vm2 = vcmask 1042434  }
   0xc   : > { %s906_s11 = sshll.u32 %s1171_s10, 6  ;;  %vm416_vm3 = vcmask 1043459   ;;  %vm418_vm4 = vcmask 1044484   ;;  %vm420_vm5 = vcmask 1045509   ;;  %vm422_vm6 = vcmask 1046534   ;;  %s881_s28 = sshll.u32 %s1171_s10, 3 }
   0xd   : > { %v459_v1 = vshrl.u32 %v458_v0, 7  ;;  %s326_s14 = scalar_lea.vmem %s1160_s0, %s906_s11  ;;  %vm424_vm7 = vcmask 1047559   ;;  %vm426_vm8 = vcmask 261120   ;;  %vm553_vm11 = vcmask 64512  }
   0xe   : > { %v331_v2 = vld [vmem:[%s326_s14] sm:$0x3f]  ;;  %v332_v3 = vld [vmem:[%s326_s14 + $0x8] sm:$0x3f]  ;;  %v333_v4 = vld [vmem:[%s326_s14 + $0x10] sm:$0x3f] }
   0xf   : > { %919 = vset.pattern.permute.xlu2 %v459_v1  ;;  %918 = vset.pattern.permute.xlu1 %v459_v1  ;;  %v334_v5 = vld [vmem:[%s326_s14 + $0x18] sm:$0x3f]  ;;  %v335_v6 = vld [vmem:[%s326_s14 + $0x20] sm:$0x3f]  ;;  %v336_v7 = vld [vmem:[%s326_s14 + $0x28] sm:$0x3f] }
  0x10   : > { %917 = vset.pattern.permute.xlu0 %v459_v1  ;;  %v337_v8 = vld [vmem:[%s326_s14 + $0x30] sm:$0x3f]  ;;  %v340_v9 = vsel %vm339_vm0, %v331_v2, 0.0  ;;  %v347_v10 = vsel %vm339_vm0, %v332_v3, 0.0  ;;  %v338_v11 = vld [vmem:[%s326_s14 + $0x38] sm:$0x3f]  ;;  %s330_s14 = scalar_lea.vmem %s1169_s9, %s881_s28 }
  0x11   : > { %v341_v12 = vrot.slane %v340_v9, 4  ;;  %v348_v13 = vrot.slane %v347_v10, 4  ;;  %v354_v14 = vsel %vm339_vm0, %v333_v4, 0.0  ;;  %v361_v15 = vsel %vm339_vm0, %v334_v5, 0.0 }
  0x12   : > { %v355_v16 = vrot.slane %v354_v14, 4  ;;  %v362_v17 = vrot.slane %v361_v15, 4  ;;  %v368_v18 = vsel %vm339_vm0, %v335_v6, 0.0  ;;  %v375_v19 = vsel %vm339_vm0, %v336_v7, 0.0 }
  0x13   : > { %v342_v20 = vadd.f32 %v341_v12, %v340_v9  ;;  %v349_v21 = vadd.f32 %v348_v13, %v347_v10  ;;  %v369_v22 = vrot.slane %v368_v18, 4  ;;  %v376_v23 = vrot.slane %v375_v19, 4 }
  0x14   : > { %v356_v24 = vadd.f32 %v355_v16, %v354_v14  ;;  %v363_v25 = vadd.f32 %v362_v17, %v361_v15  ;;  %v382_v26 = vsel %vm339_vm0, %v337_v8, 0.0  ;;  %v389_v27 = vsel %vm339_vm0, %v338_v11, 0.0 }
  0x15   : > { %v343_v28 = vrot.slane %v342_v20, 2  ;;  %v350_v29 = vrot.slane %v349_v21, 2  ;;  %v370_v30 = vadd.f32 %v369_v22, %v368_v18  ;;  %v377_v31 = vadd.f32 %v376_v23, %v375_v19 }
  0x16   : > { %v357_v32 = vrot.slane %v356_v24, 2  ;;  %v364_v33 = vrot.slane %v363_v25, 2  ;;  %v383_v34 = vrot.slane %v382_v26, 4  ;;  %v390_v35 = vrot.slane %v389_v27, 4 }
  0x17   : > { %v344_v36 = vadd.f32 %v343_v28, %v342_v20  ;;  %v351_v37 = vadd.f32 %v350_v29, %v349_v21  ;;  %v371_v38 = vrot.slane %v370_v30, 2  ;;  %v378_v39 = vrot.slane %v377_v31, 2 }
  0x18   : > { %v358_v40 = vadd.f32 %v357_v32, %v356_v24  ;;  %v365_v41 = vadd.f32 %v364_v33, %v363_v25  ;;  %v384_v42 = vadd.f32 %v383_v34, %v382_v26  ;;  %v391_v43 = vadd.f32 %v390_v35, %v389_v27 }
  0x19   : > { %v345_v44 = vrot.slane %v344_v36, 1  ;;  %v352_v45 = vrot.slane %v351_v37, 1  ;;  %v372_v46 = vadd.f32 %v371_v38, %v370_v30  ;;  %v379_v47 = vadd.f32 %v378_v39, %v377_v31 }
  0x1a   : > { %v359_v48 = vrot.slane %v358_v40, 1  ;;  %v366_v49 = vrot.slane %v365_v41, 1  ;;  %v385_v50 = vrot.slane %v384_v42, 2  ;;  %v392_v51 = vrot.slane %v391_v43, 2 }
  0x1b   : > { %v346_v52 = vadd.f32 %v345_v44, %v344_v36  ;;  %v353_v53 = vadd.f32 %v352_v45, %v351_v37  ;;  %v373_v54 = vrot.slane %v372_v46, 1  ;;  %v380_v55 = vrot.slane %v379_v47, 1 }
  0x1c   : > { %v360_v56 = vadd.f32 %v359_v48, %v358_v40  ;;  %v367_v57 = vadd.f32 %v366_v49, %v365_v41  ;;  %v386_v58 = vadd.f32 %v385_v50, %v384_v42  ;;  %v393_v59 = vadd.f32 %v392_v51, %v391_v43 }
  0x1d   : > { %v374_v60 = vadd.f32 %v373_v54, %v372_v46  ;;  %v381_v61 = vadd.f32 %v380_v55, %v379_v47  ;;  %v1011_v62 = vmul.f32 0.16666667, %v346_v52  ;;  %v1013_v63 = vmul.f32 0.16666667, %v353_v53 }
  0x1e   : > { %v387_v1 = vrot.slane %v386_v58, 1  ;;  %v394_v2 = vrot.slane %v393_v59, 1  ;;  %v1015_v3 = vmul.f32 0.16666667, %v360_v56  ;;  %v1017_v4 = vmul.f32 0.16666667, %v367_v57 }
  0x1f   : > { %v1019_v5 = vmul.f32 0.16666667, %v374_v60  ;;  %v1021_v6 = vmul.f32 0.16666667, %v381_v61  ;;  %v413_v7 = vsel %vm412_vm1, %v1013_v63, %v1011_v62  ;;  %v936_v32 = vmov 0.0  }
  0x20   : > { %v388_v8 = vadd.f32 %v387_v1, %v386_v58  ;;  %v395_v9 = vadd.f32 %v394_v2, %v393_v59  ;;  %v415_v10 = vsel %vm414_vm2, %v1015_v3, %v413_v7 }
  0x21   : > { %v417_v11 = vsel %vm416_vm3, %v1017_v4, %v415_v10  ;;  %v643_v10 = vld [vmem:[%s1161_s1 + $0x10] sm:$0xff] }
  0x22   : > { %v1030_v12 = vmul.f32 0.16666667, %v388_v8  ;;  %v1032_v13 = vmul.f32 0.16666667, %v395_v9  ;;  %v419_v14 = vsel %vm418_vm4, %v1019_v5, %v417_v11  ;;  %v644_v9 = vld [vmem:[%s1161_s1 + $0x18] sm:$0xff]  ;;  %v642_v11 = vld [vmem:[%s1161_s1 + $0x8] sm:$0xff] }
  0x23   : > { %v421_v15 = vsel %vm420_vm5, %v1021_v6, %v419_v14  ;;  %661 = vmatpush.msra.mxu1 %v644_v9  ;;  %v771_v9 = vld [vmem:[%s1167_s7 + $0x18] sm:$0xff] }
  0x24   : > { %v423_v16 = vsel %vm422_vm6, %v1030_v12, %v421_v15  ;;  %v641_v15 = vld [vmem:[%s1161_s1] sm:$0xff] }
  0x25   : > { %v1042_v17 = vsel %vm424_vm7, %v1032_v13, %v423_v16  ;;  %662 = vmatpush.msra.mxu1 %v643_v10  ;;  %v770_v10 = vld [vmem:[%s1167_s7 + $0x10] sm:$0xff] }
  0x26   : > { %882 = vmatpush.xpose.msk.msra.mxu0 %vm426_vm8, %v1042_v17 }
  0x27   : > { %663 = vmatpush.msra.mxu1 %v642_v11  ;;  %v769_v11 = vld [vmem:[%s1167_s7 + $0x8] sm:$0xff] }
  0x29   : > { %883 = vmatmul.msk.f32.vlgmr.msra.gmra.mxu0 %vm426_vm8, %v1042_v17  ;;  %664 = vmatpush.msra.mxu1 %v641_v15  ;;  %v924_v15 = vld [vmem:[%s1164_s4] ss:$0 sm:$0xff] }
  0x2a   : > { %900 = vmatmul.msk.f32.vlgmr.msra.gmra.mxu1 %vm426_vm8, %v1042_v17 }
  0xa6   : > { %v446_v18 = vpop.f32.mrf.mxu0 }
  0xa7   : > { %v485_v19 = vperm.slane %v446_v18, 4  ;;  %v471_v20 = vperm.slane %v446_v18, 2  ;;  %v457_v21 = vperm.slane %v446_v18, 0  ;;  %v492_v22 = vperm.slane %v446_v18, 5 }
  0xa8   : > { %v478_v23 = vperm.slane %v446_v18, 3  ;;  %v464_v24 = vperm.slane %v446_v18, 1  ;;  %v506_v25 = vperm.slane %v446_v18, 7  ;;  %v499_v26 = vperm.slane %v446_v18, 6 }
  0xa9   : > { %490 = vperm.xlu2 %919, %v485_v19   ;;  %476 = vperm.xlu1 %918, %v471_v20   ;;  %v451_v27 = vrot.slane %v446_v18, 2  ;;  %v452_v36 = vrot.slane %v446_v18, 3  ;;  %v450_v38 = vrot.slane %v446_v18, 1  ;;  %v453_v40 = vrot.slane %v446_v18, 4 }
  0xaa   : > { %462 = vperm.xlu0 %917, %v457_v21   ;;  %v454_v43 = vrot.slane %v446_v18, 5  ;;  %v455_v51 = vrot.slane %v446_v18, 6  ;;  %v456_v53 = vrot.slane %v446_v18, 7  ;;  %v611_v20 = vand.u32 127, %v458_v0 }
  0xab   : > { %v515_v28 = vperm.slane %v451_v27, 0  ;;  %v516_v39 = vperm.slane %v452_v36, 0  ;;  %v514_v42 = vperm.slane %v450_v38, 0  ;;  %v517_v48 = vperm.slane %v453_v40, 0 }
  0xac   : > { %v518_v52 = vperm.slane %v454_v43, 0  ;;  %v519_v54 = vperm.slane %v455_v51, 0  ;;  %v520_v60 = vperm.slane %v456_v53, 0  ;;  %v669_v51 = vld [vmem:[%s1163_s3] sm:$0xff] }
  0xad   : > { %v729_v53 = vld [vmem:[%s1166_s6] sm:$0xff] }
  0xb1   : > { %497 = vperm.xlu2 %919, %v492_v22   ;;  %483 = vperm.xlu1 %918, %v478_v23  }
  0xb2   : > { %469 = vperm.xlu0 %917, %v464_v24  }
  0xb9   : > { %511 = vperm.xlu1 %918, %v506_v25  }
  0xba   : > { %504 = vperm.xlu0 %917, %v499_v26  }
 0x103   : > { %v491_v31 = vpop.permute.xlu2 %490 }
 0x104   : > { %vm533_vm14 = vcmp.gt.f32.partialorder %v517_v48, %v491_v31 }
 0x105   : > { %v888_v56 = vsel %vm533_vm14, 1.0, %v936_v32 }
 0x106   : > { %v566_v61 = vsel %vm553_vm11, %v888_v56, 0.0 }
 0x10b   : > { %v498_v49 = vpop.permute.xlu2 %497 }
 0x10c   : > { %vm534_vm15 = vcmp.gt.f32.partialorder %v518_v52, %v498_v49  ;;  %v672_v49 = vld [vmem:[%s1163_s3 + $0x18] sm:$0xff]  ;;  %v722_v52 = vld [vmem:[%s1165_s5] sm:$0xff] }
 0x10d   : > { %v889_v57 = vsel %vm534_vm15, 1.0, %v936_v32  ;;  %689 = vmatpush.msra.mxu2 %v672_v49 }
 0x10e   : > { %v569_v2 = vsel %vm553_vm11, %v889_v57, 0.0 }
 0x11b   : > { %v477_v29 = vpop.permute.xlu1 %476 }
 0x11c   : > { %vm531_vm9 = vcmp.gt.f32.partialorder %v515_v28, %v477_v29  ;;  %v463_v30 = vpop.permute.xlu0 %462 }
 0x11d   : > { %vm529_vm10 = vcmp.gt.f32.partialorder %v457_v21, %v463_v30  ;;  %v886_v33 = vsel %vm531_vm9, 1.0, %v936_v32 }
 0x11e   : > { %v884_v34 = vsel %vm529_vm10, 1.0, %v936_v32  ;;  %v560_v35 = vsel %vm553_vm11, %v886_v33, 0.0 }
 0x11f   : > { %v554_v37 = vsel %vm553_vm11, %v884_v34, 0.0  ;;  %561 = vadd.xlane.f32.xlu1 %v560_v35 }
 0x120   : > { %555 = vadd.xlane.f32.xlu2 %v554_v37 }
 0x123   : > { %v484_v41 = vpop.permute.xlu1 %483 }
 0x124   : > { %vm532_vm12 = vcmp.gt.f32.partialorder %v516_v39, %v484_v41  ;;  %v470_v44 = vpop.permute.xlu0 %469 }
 0x125   : > { %vm530_vm13 = vcmp.gt.f32.partialorder %v514_v42, %v470_v44  ;;  %v887_v45 = vsel %vm532_vm12, 1.0, %v936_v32 }
 0x126   : > { %v563_v46 = vsel %vm553_vm11, %v887_v45, 0.0  ;;  %v885_v47 = vsel %vm530_vm13, 1.0, %v936_v32 }
 0x127   : > { %v557_v50 = vsel %vm553_vm11, %v885_v47, 0.0 }
 0x128   : > { %564 = vadd.xlane.f32.xlu2 %v563_v46  ;;  %558 = vadd.xlane.f32.xlu0 %v557_v50  ;;  %v671_v50 = vld [vmem:[%s1163_s3 + $0x10] sm:$0xff] }
 0x129   : > { %690 = vmatpush.msra.mxu2 %v671_v50 }
 0x12b   : > { %v512_v58 = vpop.permute.xlu1 %511 }
 0x12c   : > { %v505_v55 = vpop.permute.xlu0 %504  ;;  %vm536_vm9 = vcmp.gt.f32.partialorder %v520_v60, %v512_v58  ;;  %v666_v60 = vpop.f32.mrf.mxu1 }
 0x12d   : > { %vm535_vm0 = vcmp.gt.f32.partialorder %v519_v54, %v505_v55  ;;  %v891_v7 = vsel %vm536_vm9, 1.0, %v936_v32  ;;  %v937_v54 = vmov 0  }
 0x12e   : > { %v890_v59 = vsel %vm535_vm0, 1.0, %v936_v32  ;;  %v575_v8 = vsel %vm553_vm11, %v891_v7, 0.0  ;;  %920 = vset.pattern.permute.xlu1 %v937_v54  ;;  %921 = vset.pattern.permute.xlu2 %v937_v54 }
 0x12f   : > { %v572_v1 = vsel %vm553_vm11, %v890_v59, 0.0  ;;  %922 = vset.pattern.permute.xlu0 %v937_v54  ;;  %v925_v54 = vld [vmem:[%s1168_s8] ss:$0 sm:$0xff] }
 0x130   : > { %567 = vadd.xlane.f32.xlu2 %v566_v61  ;;  %573 = vadd.xlane.f32.xlu1 %v572_v1 }
 0x131   : > { %570 = vadd.xlane.f32.xlu0 %v569_v2 }
 0x138   : > { %576 = vadd.xlane.f32.xlu2 %v575_v8 }
 0x149   : > { %725 = vperm.xlu1 %920, %v722_v52  }
 0x150   : > { %732 = vperm.xlu2 %921, %v729_v53  }
 0x192   : > { %v562_v16 = vpop.xlane.xlu1 %561 }
 0x193   : > { %v556_v14 = vpop.xlane.xlu2 %555  ;;  %vm580_vm13 = vcmp.lt.f32.partialorder %v562_v16, 3.0 }
 0x194   : > { %vm578_vm10 = vcmp.lt.f32.partialorder %v556_v14, 3.0  ;;  %v894_v25 = vsel %vm580_vm13, 1.0, %v936_v32  ;;  %v768_v14 = vld [vmem:[%s1167_s7] sm:$0xff] }
 0x195   : > { %v892_v21 = vsel %vm578_vm10, 1.0, %v936_v32  ;;  %v614_v27 = vperm.slane %v894_v25, %v611_v20 }
 0x196   : > { %v612_v24 = vperm.slane %v892_v21, %v611_v20 }
 0x19b   : > { %v565_v18 = vpop.xlane.xlu2 %564  ;;  %v559_v19 = vpop.xlane.xlu0 %558 }
 0x19c   : > { %vm579_vm12 = vcmp.lt.f32.partialorder %v559_v19, 3.0  ;;  %vm581_vm14 = vcmp.lt.f32.partialorder %v565_v18, 3.0 }
 0x19d   : > { %v893_v22 = vsel %vm579_vm12, 1.0, %v936_v32  ;;  %v895_v28 = vsel %vm581_vm14, 1.0, %v936_v32 }
 0x19e   : > { %v613_v23 = vperm.slane %v893_v22, %v611_v20  ;;  %v615_v34 = vperm.slane %v895_v28, %v611_v20 }
 0x1a0   : > { %v620_v26 = vsel %vm412_vm1, %v613_v23, %v612_v24 }
 0x1a1   : > { %v621_v31 = vsel %vm414_vm2, %v614_v27, %v620_v26 }
 0x1a2   : > { %v622_v37 = vsel %vm416_vm3, %v615_v34, %v621_v31 }
 0x1a3   : > { %v568_v29 = vpop.xlane.xlu2 %567  ;;  %v574_v30 = vpop.xlane.xlu1 %573 }
 0x1a4   : > { %vm582_vm15 = vcmp.lt.f32.partialorder %v568_v29, 3.0  ;;  %v571_v0 = vpop.xlane.xlu0 %570  ;;  %vm584_vm9 = vcmp.lt.f32.partialorder %v574_v30, 3.0 }
 0x1a5   : > { %v896_v33 = vsel %vm582_vm15, 1.0, %v936_v32  ;;  %vm583_vm0 = vcmp.lt.f32.partialorder %v571_v0, 3.0  ;;  %v898_v40 = vsel %vm584_vm9, 1.0, %v936_v32 }
 0x1a6   : > { %v616_v35 = vperm.slane %v896_v33, %v611_v20  ;;  %v897_v36 = vsel %vm583_vm0, 1.0, %v936_v32  ;;  %v618_v43 = vperm.slane %v898_v40, %v611_v20 }
 0x1a7   : > { %v617_v38 = vperm.slane %v897_v36, %v611_v20 }
 0x1a8   : > { %v623_v39 = vsel %vm418_vm4, %v616_v35, %v622_v37 }
 0x1a9   : > { %v624_v42 = vsel %vm420_vm5, %v617_v38, %v623_v39 }
 0x1aa   : > { %v625_v46 = vsel %vm422_vm6, %v618_v43, %v624_v42 }
 0x1ab   : > { %v577_v41 = vpop.xlane.xlu2 %576 }
 0x1ac   : > { %vm585_vm10 = vcmp.lt.f32.partialorder %v577_v41, 3.0 }
 0x1ad   : > { %v899_v44 = vsel %vm585_vm10, 1.0, %v936_v32  ;;  %v670_v32 = vld [vmem:[%s1163_s3 + $0x8] sm:$0xff] }
 0x1ae   : > { %v619_v45 = vperm.slane %v899_v44, %v611_v20  ;;  %691 = vmatpush.msra.mxu2 %v670_v32 }
 0x1b0   : > { %v626_v47 = vsel %vm424_vm7, %v619_v45, %v625_v46  ;;  %692 = vmatpush.msra.mxu2 %v669_v51 }
 0x1b1   : > { %v628_v48 = vsel %vm553_vm11, %v626_v47, 0.0  ;;  %901 = vmatmul.msk.f32.vlgmr.msra.gmra.mxu2 %vm426_vm8, %v1042_v17  ;;  %v923_v17 = vld [vmem:[%s1162_s2] ss:$0 sm:$0xff] }
 0x1b2   : > { %629 = vadd.xlane.f32.xlu0 %v628_v48  ;;  %v667_v1 = vadd.f32 %v923_v17, %v666_v60 }
 0x1b3   : > { %v733_v23 = vpop.permute.xlu2 %732 }
 0x1bb   : > { %v726_v21 = vpop.permute.xlu1 %725 }
 0x225   : > { %v630_v55 = vpop.xlane.xlu0 %629 }
 0x226   : > { %926 = vrsqrt.f32 %v630_v55  ;;  %vm637_vm13 = vweird.f32 %v630_v55 }
 0x22c   : > { %v927_v56 = vpop.eup %926 }
 0x22d   : > { %v632_v57 = vmul.f32 %v927_v56, %v630_v55  ;;  %vm638_vm12 = vweird.f32 %v927_v56 }
 0x22e   : > { %vm639_vm14 = vmor %vm637_vm13, %vm638_vm12 }
 0x22f   : > { %v633_v58 = vmul.f32 %v927_v56, %v632_v57 }
 0x231   : > { %v634_v59 = vmul.f32 0.5, %v633_v58 }
 0x233   : > { %v635_v61 = vsub.f32 1.5, %v634_v59 }
 0x234   : > { %v694_v16 = vpop.f32.mrf.mxu2 }
 0x235   : > { %v636_v2 = vmul.f32 %v927_v56, %v635_v61  ;;  %v695_v18 = vadd.f32 %v924_v15, %v694_v16 }
 0x237   : > { %v640_v7 = vsel %vm639_vm14, %v927_v56, %v636_v2 }
 0x238   : > { %v697_v8 = vmul.f32 %v667_v1, %v640_v7 }
 0x23a   : > { %715 = vmatpush.msra.mxu3 %v697_v8 }
 0x23b   : > { %902 = vmatmul.msk.f32.vlgmr.msra.gmra.mxu3 %vm553_vm11, %v626_v47 }
 0x23c   : > { %812 = vmatpush.msrb.mxu3 %v771_v9 }
 0x23e   : > { %813 = vmatpush.msrb.mxu3 %v770_v10 }
 0x240   : > { %814 = vmatpush.msrb.mxu3 %v769_v11 }
 0x242   : > { %815 = vmatpush.msrb.mxu3 %v768_v14 }
 0x2be   : > { %v717_v19 = vpop.f32.mrf.mxu3 }
 0x2bf   : > { %v720_v20 = vmul.f32 %v717_v19, %v640_v7 }
 0x2c1   : > { %v721_v22 = vadd.f32 %v720_v20, %v695_v18 }
 0x2c3   : > { %v728_v24 = vmul.f32 %v726_v21, %v721_v22 }
 0x2c5   : > { %v735_v25 = vadd.f32 %v733_v23, %v728_v24 }
 0x2c7   : > { %v737_v26 = vrot.slane %v735_v25, 1  ;;  %v738_v27 = vrot.slane %v735_v25, 2  ;;  %v739_v28 = vrot.slane %v735_v25, 3  ;;  %v740_v29 = vrot.slane %v735_v25, 4 }
 0x2c8   : > { %v741_v30 = vrot.slane %v735_v25, 5  ;;  %v742_v0 = vrot.slane %v735_v25, 6  ;;  %v743_v31 = vrot.slane %v735_v25, 7  ;;  %v752_v33 = vadd.f32 %v735_v25, %v1011_v62 }
 0x2c9   : > { %v753_v34 = vadd.f32 %v737_v26, %v1013_v63  ;;  %v754_v35 = vadd.f32 %v738_v27, %v1015_v3  ;;  %v755_v36 = vadd.f32 %v739_v28, %v1017_v4  ;;  %v756_v37 = vadd.f32 %v740_v29, %v1019_v5 }
 0x2ca   : > { %v757_v38 = vadd.f32 %v741_v30, %v1021_v6  ;;  %v758_v39 = vadd.f32 %v742_v0, %v1030_v12  ;;  %v759_v40 = vadd.f32 %v743_v31, %v1032_v13  ;;  %v760_v45 = vmax.f32 %v752_v33, 0.0 }
 0x2cb   : > { %v761_v41 = vmax.f32 %v753_v34, 0.0  ;;  %v762_v42 = vmax.f32 %v754_v35, 0.0  ;;  %v763_v43 = vmax.f32 %v755_v36, 0.0  ;;  %v764_v44 = vmax.f32 %v756_v37, 0.0 }
 0x2cc   : > { %v765_v62 = vmax.f32 %v757_v38, 0.0  ;;  %v766_v3 = vmax.f32 %v758_v39, 0.0  ;;  %v767_v47 = vmax.f32 %v759_v40, 0.0 }
 0x2cd   : > { %v784_v46 = vrot.slane %v761_v41, 7  ;;  %v786_v63 = vrot.slane %v762_v42, 6  ;;  %v788_v5 = vrot.slane %v763_v43, 5  ;;  %v790_v48 = vrot.slane %v764_v44, 4 }
 0x2ce   : > { %v792_v13 = vrot.slane %v765_v62, 3  ;;  %v794_v50 = vrot.slane %v766_v3, 2  ;;  %v796_v51 = vrot.slane %v767_v47, 1 }
 0x2cf   : > { %v785_v4 = vsel %vm412_vm1, %v784_v46, %v760_v45 }
 0x2d0   : > { %v787_v6 = vsel %vm414_vm2, %v786_v63, %v785_v4 }
 0x2d1   : > { %v789_v12 = vsel %vm416_vm3, %v788_v5, %v787_v6 }
 0x2d2   : > { %v791_v49 = vsel %vm418_vm4, %v790_v48, %v789_v12 }
 0x2d3   : > { %v793_v32 = vsel %vm420_vm5, %v792_v13, %v791_v49 }
 0x2d4   : > { %v795_v52 = vsel %vm422_vm6, %v794_v50, %v793_v32 }
 0x2d5   : > { %v797_v53 = vsel %vm424_vm7, %v796_v51, %v795_v52 }
 0x2d6   : > { %903 = vmatmul.msk.f32.vlgmr.msrb.gmra.mxu3 %vm426_vm8, %v797_v53 }
 0x359   : > { %v817_v55 = vpop.f32.mrf.mxu3 }
 0x35a   : > { %v818_v56 = vadd.f32 %v925_v54, %v817_v55 }
 0x35c   : > { %820 = vst [vmem:[%s330_s14] sm:$0xff] %v818_v56 }
 0x35d PF: > { %s19_s30 = sadd.s32 1, %s934_s30  }
 0x35e   : > { %p16_p4 = scmp.ge.s32.totalorder %s19_s30, 4  }
 0x360   :  { %18 = sbr.rel (!%p16_p4) target bundleno = 1 (0x1), region = 86 }

</bundles_post_ra>
